<compile_context>
chip_gen: v7x
topology: tpu7x:2x2x1
jax: 0.10.0
libtpu: 0.0.40
codegen_flags: <defaults>
</compile_context>

<pallas_src>
import jax
import jax.numpy as jnp
from jax import lax
from jax.experimental import pallas as pl
from jax.experimental.pallas import tpu as pltpu

# ---- static problem sizes (small, consistent with the module) ---------------
N, C, H, W = 2, 1, 4, 2          # input  (NCHW)
OC, KH, KW = 2, 2, 2             # conv1 = Conv2d(1, 2, 2)
OH, OW = H - KH + 1, W - KW + 1  # 3, 1   (VALID conv)
L1_OUT = 4                       # linear1 = Linear(1, 4)
M = N * OH * OW                  # 6  im2col rows
K = C * KH * KW                  # 4  im2col cols
NUM_W = OC * K                   # 8 folded conv weights, then OC folded biases


def fused_kernel(pt_ref, params_ref, o_ref):
    """out[oc, m] = sum_k patches_T[k, m] * w_folded[oc, k] + b_folded[oc].

    pt_ref:     VMEM (K, M) f32  im2col'd input, transposed so rows are lane-dense
    params_ref: SMEM (NUM_W + OC,) f32  [w_folded (oc-major) ... b_folded]
    o_ref:      VMEM (OC, M) f32
    """
    pt = pt_ref[...]
    rows = []
    for oc in range(OC):                          # static unroll (OC = 2)
        acc = pt[0:1, :] * params_ref[oc * K + 0]
        for k in range(1, K):                     # static unroll (K = 4)
            acc = acc + pt[k:k + 1, :] * params_ref[oc * K + k]
        rows.append(acc + params_ref[NUM_W + oc])
    o_ref[...] = jnp.concatenate(rows, axis=0)    # (OC, M), single store


@jax.jit
def model_forward(x, conv_w, conv_b, w1, b1, w2, b2):
    # ---- im2col (tiny, statically unrolled), built directly as (K, M) -------
    cols = []
    for c in range(C):
        for kh in range(KH):
            for kw in range(KW):
                cols.append(x[:, c, kh:kh + OH, kw:kw + OW].reshape(M))
    patches_t = jnp.stack(cols, axis=0)                       # (K, M)

    # ---- fold linear1 -> linear2 into scalar scale s / offset t -------------
    # conv's trailing dim is 1, so F.linear(conv, W1, b1) then linear2 collapses:
    #   out = conv * sum(W1[:,0] * W2[0,:]) + (sum(b1 * W2[0,:]) + b2)
    s = jnp.sum(w1.reshape(-1) * w2.reshape(-1))
    t = jnp.sum(b1 * w2.reshape(-1)) + b2[0]
    w_folded = conv_w.reshape(OC, K) * s                      # (OC, K)
    b_folded = conv_b * s + t                                 # (OC,)
    params = jnp.concatenate(
        [w_folded.reshape(-1), b_folded]).astype(jnp.float32)  # (NUM_W + OC,)

    out_flat = pl.pallas_call(
        fused_kernel,
        grid=(1,),
        out_shape=jax.ShapeDtypeStruct((OC, M), jnp.float32),
        in_specs=[
            pl.BlockSpec((K, M), lambda i: (0, 0)),                 # VMEM data
            pl.BlockSpec(memory_space=pltpu.MemorySpace.SMEM),      # packed scalars
        ],
        out_specs=pl.BlockSpec((OC, M), lambda i: (0, 0)),
        compiler_params=pltpu.CompilerParams(
            dimension_semantics=("parallel",)),
    )(patches_t, params)

    # (OC, M) with m = n*OH + oh (OW == 1)  ->  (N, OC, OH, 1)
    return out_flat.reshape(OC, N, OH).transpose(1, 0, 2)[..., None]


if __name__ == "__main__":
    key = jax.random.PRNGKey(0)
    kx, kcw, kcb, k1w, k1b, k2w, k2b = jax.random.split(key, 7)

    x = jax.random.normal(kx, (N, C, H, W), jnp.float32)
    conv_w = jax.random.normal(kcw, (OC, C, KH, KW), jnp.float32) * 0.5
    conv_b = jax.random.normal(kcb, (OC,), jnp.float32) * 0.1
    w1 = jax.random.normal(k1w, (L1_OUT, 1), jnp.float32) * 0.5   # linear1: Linear(1, 4)
    b1 = jax.random.normal(k1b, (L1_OUT,), jnp.float32) * 0.1
    w2 = jax.random.normal(k2w, (1, L1_OUT), jnp.float32) * 0.5   # linear2 (widened to in=4)
    b2 = jax.random.normal(k2b, (1,), jnp.float32) * 0.1

    out = jax.block_until_ready(model_forward(x, conv_w, conv_b, w1, b1, w2, b2))

    # plain-JAX reference (unfolded forward) for sanity
    conv_ref = lax.conv_general_dilated(
        x, conv_w, (1, 1), "VALID",
        dimension_numbers=("NCHW", "OIHW", "NCHW")) + conv_b.reshape(1, OC, 1, 1)
    v1_ref = jnp.matmul(conv_ref, w1.T) + b1          # (N, OC, OH, 4)
    ref = jnp.matmul(v1_ref, w2.T) + b2               # (N, OC, OH, 1)

    assert out.shape == (N, OC, OH, 1), out.shape
    assert jnp.allclose(out, ref, atol=1e-5, rtol=1e-5), (out, ref)
    print("KERNEL_OK")
</pallas_src>

<mosaic_0001>
module attributes {stable_mosaic.version = 11 : i64} {
  func.func @fused_kernel(%arg0: i32, %arg1: memref<4x6xf32, #tpu.memory_space<vmem>>, %arg2: memref<10xf32, #tpu.memory_space<smem>>, %arg3: memref<2x6xf32, #tpu.memory_space<vmem>>) attributes {dimension_semantics = [#tpu.dimension_semantics<parallel>], iteration_bounds = array<i64: 1>, scalar_prefetch = 0 : i64, scratch_operands = 0 : i64, tpu.core_type = #tpu.core_type<tc>, window_params = [{pipeline_mode = #tpu.pipeline_mode<synchronous>, transform_indices = @transform_0, window_bounds = array<i64: 4, 6>}, {transform_indices = @transform_1, window_bounds = array<i64: 10>}, {pipeline_mode = #tpu.pipeline_mode<synchronous>, transform_indices = @transform_2, window_bounds = array<i64: 2, 6>}]} {
    %c0 = arith.constant 0 : index
    %c0_0 = arith.constant 0 : index
    %0 = vector.load %arg1[%c0, %c0_0] : memref<4x6xf32, #tpu.memory_space<vmem>>, vector<4x6xf32>
    %1 = vector.extract_strided_slice %0 {offsets = [0, 0], sizes = [1, 6], strides = [1, 1]} : vector<4x6xf32> to vector<1x6xf32>
    %c0_1 = arith.constant 0 : index
    %2 = memref.load %arg2[%c0_1] : memref<10xf32, #tpu.memory_space<smem>>
    %3 = vector.broadcast %2 : f32 to vector<1x6xf32>
    %4 = arith.mulf %1, %3 : vector<1x6xf32>
    %5 = vector.extract_strided_slice %0 {offsets = [1, 0], sizes = [1, 6], strides = [1, 1]} : vector<4x6xf32> to vector<1x6xf32>
    %c1 = arith.constant 1 : index
    %6 = memref.load %arg2[%c1] : memref<10xf32, #tpu.memory_space<smem>>
    %7 = vector.broadcast %6 : f32 to vector<1x6xf32>
    %8 = arith.mulf %5, %7 : vector<1x6xf32>
    %9 = arith.addf %4, %8 : vector<1x6xf32>
    %10 = vector.extract_strided_slice %0 {offsets = [2, 0], sizes = [1, 6], strides = [1, 1]} : vector<4x6xf32> to vector<1x6xf32>
    %c2 = arith.constant 2 : index
    %11 = memref.load %arg2[%c2] : memref<10xf32, #tpu.memory_space<smem>>
    %12 = vector.broadcast %11 : f32 to vector<1x6xf32>
    %13 = arith.mulf %10, %12 : vector<1x6xf32>
    %14 = arith.addf %9, %13 : vector<1x6xf32>
    %15 = vector.extract_strided_slice %0 {offsets = [3, 0], sizes = [1, 6], strides = [1, 1]} : vector<4x6xf32> to vector<1x6xf32>
    %c3 = arith.constant 3 : index
    %16 = memref.load %arg2[%c3] : memref<10xf32, #tpu.memory_space<smem>>
    %17 = vector.broadcast %16 : f32 to vector<1x6xf32>
    %18 = arith.mulf %15, %17 : vector<1x6xf32>
    %19 = arith.addf %14, %18 : vector<1x6xf32>
    %c8 = arith.constant 8 : index
    %20 = memref.load %arg2[%c8] : memref<10xf32, #tpu.memory_space<smem>>
    %21 = vector.broadcast %20 : f32 to vector<1x6xf32>
    %22 = arith.addf %19, %21 : vector<1x6xf32>
    %23 = vector.extract_strided_slice %0 {offsets = [0, 0], sizes = [1, 6], strides = [1, 1]} : vector<4x6xf32> to vector<1x6xf32>
    %c4 = arith.constant 4 : index
    %24 = memref.load %arg2[%c4] : memref<10xf32, #tpu.memory_space<smem>>
    %25 = vector.broadcast %24 : f32 to vector<1x6xf32>
    %26 = arith.mulf %23, %25 : vector<1x6xf32>
    %27 = vector.extract_strided_slice %0 {offsets = [1, 0], sizes = [1, 6], strides = [1, 1]} : vector<4x6xf32> to vector<1x6xf32>
    %c5 = arith.constant 5 : index
    %28 = memref.load %arg2[%c5] : memref<10xf32, #tpu.memory_space<smem>>
    %29 = vector.broadcast %28 : f32 to vector<1x6xf32>
    %30 = arith.mulf %27, %29 : vector<1x6xf32>
    %31 = arith.addf %26, %30 : vector<1x6xf32>
    %32 = vector.extract_strided_slice %0 {offsets = [2, 0], sizes = [1, 6], strides = [1, 1]} : vector<4x6xf32> to vector<1x6xf32>
    %c6 = arith.constant 6 : index
    %33 = memref.load %arg2[%c6] : memref<10xf32, #tpu.memory_space<smem>>
    %34 = vector.broadcast %33 : f32 to vector<1x6xf32>
    %35 = arith.mulf %32, %34 : vector<1x6xf32>
    %36 = arith.addf %31, %35 : vector<1x6xf32>
    %37 = vector.extract_strided_slice %0 {offsets = [3, 0], sizes = [1, 6], strides = [1, 1]} : vector<4x6xf32> to vector<1x6xf32>
    %c7 = arith.constant 7 : index
    %38 = memref.load %arg2[%c7] : memref<10xf32, #tpu.memory_space<smem>>
    %39 = vector.broadcast %38 : f32 to vector<1x6xf32>
    %40 = arith.mulf %37, %39 : vector<1x6xf32>
    %41 = arith.addf %36, %40 : vector<1x6xf32>
    %c9 = arith.constant 9 : index
    %42 = memref.load %arg2[%c9] : memref<10xf32, #tpu.memory_space<smem>>
    %43 = vector.broadcast %42 : f32 to vector<1x6xf32>
    %44 = arith.addf %41, %43 : vector<1x6xf32>
    %45 = tpu.concatenate %22, %44 in 0 : vector<1x6xf32>, vector<1x6xf32> -> vector<2x6xf32>
    %c0_2 = arith.constant 0 : index
    %c0_3 = arith.constant 0 : index
    %46 = vector.load %arg3[%c0_2, %c0_3] : memref<2x6xf32, #tpu.memory_space<vmem>>, vector<2x6xf32>
    tpu.vector_store %arg3[%c0_2, %c0_3], %45 {strides = array<i32>} : memref<2x6xf32, #tpu.memory_space<vmem>>, vector<2x6xf32>,
    return
  }
  func.func @transform_0(%arg0: i32) -> (i32, i32) {
    %c0_i32 = arith.constant 0 : i32
    %c0_i32_0 = arith.constant 0 : i32
    %c0_i32_1 = arith.constant 0 : i32
    return %c0_i32, %c0_i32_0 : i32, i32
  }
  func.func @transform_1(%arg0: i32) -> i32 {
    %c0_i32 = arith.constant 0 : i32
    %c0_i32_0 = arith.constant 0 : i32
    return %c0_i32 : i32
  }
  func.func @transform_2(%arg0: i32) -> (i32, i32) {
    %c0_i32 = arith.constant 0 : i32
    %c0_i32_0 = arith.constant 0 : i32
    %c0_i32_1 = arith.constant 0 : i32
    return %c0_i32, %c0_i32_0 : i32, i32
  }
}

</mosaic_0001>

<bundles_post_ra>
// kernel: squeeze.5
= control target key start
LH: loop header
LB: loop body
LE: loop exit
PB: predicated region body
PF: predicated region fallthrough
CT: control target
= control target key end

     0   :  { %vm7_vm0 = vcmask 23552   ;;  %vm13_vm1 = vcmask 48152   ;;  %s39_s0 = inlined_call_operand.vmem [shape: f32[2,3], index: 0, kind: input, shape index: {}]   ;;  %s40_s1 = inlined_call_operand.vmem [shape: f32[1,6], index: 1, kind: output, shape index: {}]  }
   0x1   :  { %v4_v0 = vld [vmem:[%s39_s0] sm:$0x3]  ;;  %s22_s0 = smov 3  }
   0x2   :  { %5 = vst [vmem:[#allocation1] sm:$0x3] %v4_v0 }
   0x9   :  { %v10_v1 = vld [vmem:[#allocation1 + $0x1] sm:$0x1]   ;;  %v6_v2 = vld [vmem:[#allocation1] sm:$0x1]  }
   0xa   :  { %11 = vrot.lane.b32.xlu0 %v10_v1, %s22_s0  ;;  %8 = vst.msk [vmem:[#allocation0] sm:$0x1] %vm7_vm0, %v6_v2  }
  0x7c   :  { %v12_v3 = vpop.permute.xlu0 %11  }
  0x7d   :  { %14 = vst.msk [vmem:[#allocation0] sm:$0x1] %vm13_vm1, %v12_v3  }
  0x84   :  { %v18_v4 = vld [vmem:[#allocation0] sm:$0x1] }
  0x85   :  { %20 = vst [vmem:[%s40_s1] sm:$0x1] %v18_v4 }

// kernel: model_forward.1
= control target key start
LH: loop header
LB: loop body
LE: loop exit
PB: predicated region body
PF: predicated region fallthrough
CT: control target
= control target key end

     0   :  { %7 = vsyncpa [#allocation3], 0  ;;  %s140_s0 = inlined_call_operand.vmem [shape: f32[4,6], index: 0, kind: input, shape index: {}]   ;;  %s141_s1 = inlined_call_operand.vmem [shape: f32[10], index: 1, kind: input, shape index: {}]   ;;  %s142_s2 = inlined_call_operand.vmem [shape: f32[2,6], index: 2, kind: output, shape index: {}]  }
   0x1   :  { %s16_s11 = sshll.u32 %s141_s1, 4  ;;  %s17_s11 = int_to_ptr.vmem [resolvable:$true] %s16_s11 }
   0x2   :  { %s101_s12 = scalar_lea.vmem %s17_s11, 16  ;;  %p106_p1 = scmp.lt.s32.totalorder %s17_s11, %s17_s11 }
   0x3   :  { %p102_p0 = scmp.ne.s32.totalorder %s17_s11, %s101_s12  ;;  %p107_p2 = scmp.lt.s32.totalorder %s101_s12, %s101_s12 }
   0x5   :  { %p108_p3 = por %p107_p2, %p106_p1 }
   0x7   :  { %p109_p4 = pnand %p108_p3, %p102_p0 }
   0x9   :  { %112 = shalt.err (!%p109_p4)
}
   0xa   :  { %s115_s13 = smov [#allocation2]  }
   0xb   :  { %19 = dma.vmem_to_smem %s17_s11, 16, %s115_s13, [#allocation3]  }
   0xc   :  { %113 = dma.done.wait [#allocation3], 16  }
   0xd   :  { %114 = vsyncadd [#allocation3], 4294967280 }
   0xe   :  { %23 = sfence }
   0xf   :  { %s25_s14 = sld [smem:[#allocation2]]  ;;  %s91_s15 = sld [smem:[#allocation2 + $0x1]]  ;;  %v24_v0 = vld [vmem:[%s140_s0] sm:$0xf]  ;;  %vm82_vm0 = vcmask 1040384   ;;  %vm84_vm1 = vcmask 41984  }
  0x10   :  { %s92_s16 = sld [smem:[#allocation2 + $0x2]]  ;;  %s93_s17 = sld [smem:[#allocation2 + $0x3]] }
  0x11   :  { %s95_s18 = sld [smem:[#allocation2 + $0x4]]  ;;  %s96_s19 = sld [smem:[#allocation2 + $0x5]] }
  0x12   :  { %s97_s1 = sld [smem:[#allocation2 + $0x6]]  ;;  %s98_s20 = sld [smem:[#allocation2 + $0x7]] }
  0x13   :  { %s94_s23 = sld [smem:[#allocation2 + $0x8]]  ;;  %s99_s24 = sld [smem:[#allocation2 + $0x9]] }
  0x15   :  { %v26_v1 = vstv %s25_s14  ;;  %v29_v2 = vstv %s91_s15 }
  0x16   :  { %v27_v3 = vmul.f32 %v26_v1, %v24_v0  ;;  %v30_v4 = vmul.f32 %v29_v2, %v24_v0  ;;  %v36_v5 = vstv %s92_s16  ;;  %v43_v6 = vstv %s93_s17 }
  0x17   :  { %v37_v7 = vmul.f32 %v36_v5, %v24_v0  ;;  %v44_v8 = vmul.f32 %v43_v6, %v24_v0  ;;  %v53_v9 = vstv %s95_s18  ;;  %v56_v11 = vstv %s96_s19 }
  0x18   :  { %v32_v10 = vrot.slane %v30_v4, 1  ;;  %v63_v12 = vstv %s97_s1  ;;  %v54_v14 = vmul.f32 %v53_v9, %v24_v0  ;;  %v57_v15 = vmul.f32 %v56_v11, %v24_v0 }
  0x19   :  { %v39_v13 = vrot.slane %v37_v7, 2  ;;  %v64_v16 = vmul.f32 %v63_v12, %v24_v0  ;;  %v70_v18 = vstv %s98_s20  ;;  %v46_v19 = vrot.slane %v44_v8, 3 }
  0x1a   :  { %v34_v17 = vadd.f32 %v32_v10, %v27_v3  ;;  %v59_v20 = vrot.slane %v57_v15, 1  ;;  %v71_v22 = vmul.f32 %v70_v18, %v24_v0  ;;  %v50_v28 = vstv %s94_s23 }
  0x1b   :  { %v66_v21 = vrot.slane %v64_v16, 2  ;;  %v77_v29 = vstv %s99_s24 }
  0x1c   :  { %v41_v23 = vadd.f32 %v39_v13, %v34_v17  ;;  %v61_v24 = vadd.f32 %v59_v20, %v54_v14  ;;  %v73_v25 = vrot.slane %v71_v22, 3 }
  0x1e   :  { %v48_v26 = vadd.f32 %v46_v19, %v41_v23  ;;  %v68_v27 = vadd.f32 %v66_v21, %v61_v24 }
  0x20   :  { %v75_v30 = vadd.f32 %v73_v25, %v68_v27  ;;  %v51_v31 = vadd.f32 %v50_v28, %v48_v26 }
  0x22   :  { %v78_v32 = vadd.f32 %v77_v29, %v75_v30 }
  0x24   :  { %v80_v33 = vrot.slane %v78_v32, 7 }
  0x26   :  { %v83_v34 = vsel %vm82_vm0, %v51_v31, %v80_v33 }
  0x27   :  { %85 = vst.msk [vmem:[%s142_s2] sm:$0x3] %vm84_vm1, %v83_v34 }
  0x28   :  { %90 = vsyncpa [#allocation3], 1 }

</bundles_post_ra>
